<compile_context>
chip_gen: v6e
topology: v6e:2x2x1
jax: 0.10.0
libtpu: 0.0.40
codegen_flags: <defaults>
</compile_context>

<pallas_src>
import functools

import jax
import jax.numpy as jnp
from jax.experimental import pallas as pl
from jax.experimental.pallas import tpu as pltpu


def _round_up(n: int, m: int) -> int:
    return (n + m - 1) // m * m


def _vmem_capacity_bytes() -> int:
    try:
        return int(pltpu.get_tpu_info().vmem_capacity_bytes)
    except Exception:
        return 64 << 20  # conservative fallback (v7x per-core VMEM)


def _pick_tile_m(batch: int, nb_movies: int, tile_m: int, vmem_limit: int) -> int:
    """Largest 8-aligned batch tile whose double-buffered x/out tiles plus the
    resident (lane/sublane padded) weights fit under the VMEM limit."""
    lane, sub = 128, 8
    pad = lambda n, m: _round_up(n, m)
    # Resident f32 weights/biases as laid out in VMEM (conservatively x2 buffers).
    weight_bytes = 2 * (
        pad(nb_movies, sub) * pad(20, lane) * 4      # w1
        + pad(20, sub) * pad(10, lane) * 4           # w2
        + pad(10, sub) * pad(20, lane) * 4           # w3
        + pad(20, sub) * pad(nb_movies, lane) * 4    # w4
        + sub * pad(20, lane) * 4 * 2                # b1, b3
        + sub * pad(10, lane) * 4                    # b2
        + sub * pad(nb_movies, lane) * 4             # b4
    )
    # TODO(synk): for very large nb_movies the (nb_movies, 20) w1 layout lane-pads
    # 20 -> 128 (6.4x VMEM); a transposed (20, nb_movies) layout would shrink it.
    headroom = 4 << 20
    budget = vmem_limit - weight_bytes - headroom
    per_row = 4 * pad(nb_movies, lane) * 4           # 2 x-buffers + 2 out-buffers, f32
    tm_cap = max(8, (budget // per_row) // 8 * 8)
    tm = min(_round_up(tile_m, 8), tm_cap, _round_up(batch, 8))
    # Keep >=2 grid steps when the batch allows it (feeds both TCs on megacore).
    if batch >= 16 and pl.cdiv(batch, tm) < 2:
        tm = _round_up(pl.cdiv(batch, 2), 8)
    return tm


def sae_kernel(x_ref,
               w1_ref, b1_ref,
               w2_ref, b2_ref,
               w3_ref, b3_ref,
               w4_ref, b4_ref,
               out_ref):
    """Fused fc1..fc4 forward for one (TM, nb_movies) batch tile, all in VMEM/f32."""
    x = x_ref[...]
    h = jax.nn.sigmoid(
        jnp.dot(x, w1_ref[...], preferred_element_type=jnp.float32) + b1_ref[...])
    h = jax.nn.sigmoid(
        jnp.dot(h, w2_ref[...], preferred_element_type=jnp.float32) + b2_ref[...])
    h = jax.nn.sigmoid(
        jnp.dot(h, w3_ref[...], preferred_element_type=jnp.float32) + b3_ref[...])
    y = jnp.dot(h, w4_ref[...], preferred_element_type=jnp.float32) + b4_ref[...]
    out_ref[...] = y.astype(out_ref.dtype)


@functools.partial(jax.jit, static_argnames=("tile_m",))
def sae_forward(x, params, *, tile_m: int = 1024):
    """x: (B, nb_movies) float32.  params: dict of (in,out) weights + (1,out) biases."""
    B, nb_movies = x.shape

    vmem_cap = _vmem_capacity_bytes()
    vmem_limit = min(int(vmem_cap * 0.8), 112 << 20)   # ~51 MiB on v7x, ~102 MiB on v5e/v6e
    TM = _pick_tile_m(B, nb_movies, tile_m, vmem_limit)
    grid = (pl.cdiv(B, TM),)

    w1, b1 = params["w1"], params["b1"]
    w2, b2 = params["w2"], params["b2"]
    w3, b3 = params["w3"], params["b3"]
    w4, b4 = params["w4"], params["b4"]

    # Weights/biases: full-extent blocks, constant index_map -> resident in VMEM.
    def resident(a):
        return pl.BlockSpec(a.shape, lambda i: (0,) * a.ndim)

    # x / out tiles: streamed over the batch grid, full feature extent (no padding,
    # no wrapper-side slicing); the last block may be a ragged (masked) tail.
    x_spec = pl.BlockSpec((TM, nb_movies), lambda i: (i, 0))
    out_spec = pl.BlockSpec((TM, nb_movies), lambda i: (i, 0))

    hidden_flops = 2 * (nb_movies * 20 + 20 * 10 + 10 * 20 + 20 * nb_movies)
    weight_elems = w1.size + w2.size + w3.size + w4.size + b1.size + b2.size + b3.size + b4.size
    cost = pl.CostEstimate(
        flops=int(B * hidden_flops),
        transcendentals=int(B * 50),                 # sigmoids: 20 + 10 + 20 per row
        bytes_accessed=int(2 * B * nb_movies * 4 + weight_elems * 4),
    )

    return pl.pallas_call(
        sae_kernel,
        out_shape=jax.ShapeDtypeStruct((B, nb_movies), jnp.float32),
        grid=grid,
        in_specs=[x_spec,
                  resident(w1), resident(b1),
                  resident(w2), resident(b2),
                  resident(w3), resident(b3),
                  resident(w4), resident(b4)],
        out_specs=out_spec,
        cost_estimate=cost,
        compiler_params=pltpu.CompilerParams(
            dimension_semantics=("parallel",),
            vmem_limit_bytes=vmem_limit,
        ),
    )(x, w1, b1, w2, b2, w3, b3, w4, b4)


def init_params(key, nb_movies):
    """PyTorch nn.Linear-style init (U[-1/sqrt(in), 1/sqrt(in)]).
    Weights stored as (in_features, out_features) so each layer is x @ W + b."""
    dims = [(nb_movies, 20), (20, 10), (10, 20), (20, nb_movies)]
    params = {}
    for i, (fan_in, fan_out) in enumerate(dims, start=1):
        key, kw, kb = jax.random.split(key, 3)
        bound = 1.0 / jnp.sqrt(float(fan_in))
        params[f"w{i}"] = jax.random.uniform(
            kw, (fan_in, fan_out), jnp.float32, minval=-bound, maxval=bound)
        params[f"b{i}"] = jax.random.uniform(
            kb, (1, fan_out), jnp.float32, minval=-bound, maxval=bound)
    return params


def sae_reference_f32(x, p):
    """Full-precision reference (PyTorch semantics)."""
    h = jax.nn.sigmoid(x @ p["w1"] + p["b1"])
    h = jax.nn.sigmoid(h @ p["w2"] + p["b2"])
    h = jax.nn.sigmoid(h @ p["w3"] + p["b3"])
    return h @ p["w4"] + p["b4"]


if __name__ == "__main__":
    # Deliberately misaligned small shapes: unaligned lane dim (37), batch that
    # doesn't divide the tile (13 with TM=8 -> 2-step grid with a ragged tail).
    nb_movies = 37   # stands in for int(max(ratings movie ids)) in the original script
    batch = 13       # users per batch

    key = jax.random.PRNGKey(0)
    key, kx = jax.random.split(key)
    # ratings-like input in [0, 5]
    x = jax.random.uniform(kx, (batch, nb_movies), jnp.float32, minval=0.0, maxval=5.0)

    params = init_params(key, nb_movies)

    out = sae_forward(x, params, tile_m=8)   # TM=8 -> grid of 2 steps (ragged tail)
    out = jax.block_until_ready(out)

    ref = sae_reference_f32(x, params)

    assert out.shape == (batch, nb_movies)
    assert bool(jnp.all(jnp.isfinite(out)))
    # Tolerance covers MXU matmul pass precision differences vs the XLA reference.
    assert jnp.allclose(out, ref, atol=5e-2, rtol=5e-2)

    # Also exercise the default (large-tile) path once.
    out2 = jax.block_until_ready(sae_forward(x, params))
    assert jnp.allclose(out2, ref, atol=5e-2, rtol=5e-2)

    print("KERNEL_OK")
</pallas_src>

<mosaic_0001>
module attributes {stable_mosaic.version = 11 : i64} {
  func.func @sae_kernel(%arg0: i32, %arg1: memref<8x37xf32, #tpu.memory_space<vmem>>, %arg2: memref<37x20xf32, #tpu.memory_space<vmem>>, %arg3: memref<1x20xf32, #tpu.memory_space<vmem>>, %arg4: memref<20x10xf32, #tpu.memory_space<vmem>>, %arg5: memref<1x10xf32, #tpu.memory_space<vmem>>, %arg6: memref<10x20xf32, #tpu.memory_space<vmem>>, %arg7: memref<1x20xf32, #tpu.memory_space<vmem>>, %arg8: memref<20x37xf32, #tpu.memory_space<vmem>>, %arg9: memref<1x37xf32, #tpu.memory_space<vmem>>, %arg10: memref<8x37xf32, #tpu.memory_space<vmem>>) attributes {dimension_semantics = [#tpu.dimension_semantics<parallel>], iteration_bounds = array<i64: 2>, scalar_prefetch = 0 : i64, scratch_operands = 0 : i64, tpu.core_type = #tpu.core_type<tc>, window_params = [{transform_indices = @transform_0, window_bounds = array<i64: 8, 37>}, {pipeline_mode = #tpu.pipeline_mode<synchronous>, transform_indices = @transform_1, window_bounds = array<i64: 37, 20>}, {pipeline_mode = #tpu.pipeline_mode<synchronous>, transform_indices = @transform_2, window_bounds = array<i64: 1, 20>}, {pipeline_mode = #tpu.pipeline_mode<synchronous>, transform_indices = @transform_3, window_bounds = array<i64: 20, 10>}, {pipeline_mode = #tpu.pipeline_mode<synchronous>, transform_indices = @transform_4, window_bounds = array<i64: 1, 10>}, {pipeline_mode = #tpu.pipeline_mode<synchronous>, transform_indices = @transform_5, window_bounds = array<i64: 10, 20>}, {pipeline_mode = #tpu.pipeline_mode<synchronous>, transform_indices = @transform_6, window_bounds = array<i64: 1, 20>}, {pipeline_mode = #tpu.pipeline_mode<synchronous>, transform_indices = @transform_7, window_bounds = array<i64: 20, 37>}, {pipeline_mode = #tpu.pipeline_mode<synchronous>, transform_indices = @transform_8, window_bounds = array<i64: 1, 37>}, {transform_indices = @transform_9, window_bounds = array<i64: 8, 37>}]} {
    %c0 = arith.constant 0 : index
    %c0_0 = arith.constant 0 : index
    %0 = vector.load %arg1[%c0, %c0_0] : memref<8x37xf32, #tpu.memory_space<vmem>>, vector<8x37xf32>
    %c0_1 = arith.constant 0 : index
    %c0_2 = arith.constant 0 : index
    %1 = vector.load %arg2[%c0_1, %c0_2] : memref<37x20xf32, #tpu.memory_space<vmem>>, vector<37x20xf32>
    %cst = arith.constant dense<0.000000e+00> : vector<8x20xf32>
    %2 = tpu.matmul %0, %1, %cst {dimension_numbers = #tpu.dot_dimension_numbers<[1], [0], [0], [1], [0, 0, 1, 1], [], []>} : vector<8x37xf32>, vector<37x20xf32>, vector<8x20xf32> -> vector<8x20xf32>
    %c0_3 = arith.constant 0 : index
    %c0_4 = arith.constant 0 : index
    %3 = vector.load %arg3[%c0_3, %c0_4] : memref<1x20xf32, #tpu.memory_space<vmem>>, vector<1x20xf32>
    %4 = vector.broadcast %3 : vector<1x20xf32> to vector<8x20xf32>
    %5 = arith.addf %2, %4 : vector<8x20xf32>
    %6 = arith.negf %5 : vector<8x20xf32>
    %7 = math.exp %6 : vector<8x20xf32>
    %cst_5 = arith.constant 1.000000e+00 : f32
    %8 = vector.broadcast %cst_5 : f32 to vector<8x20xf32>
    %9 = arith.addf %8, %7 : vector<8x20xf32>
    %10 = arith.divf %8, %9 : vector<8x20xf32>
    %c0_6 = arith.constant 0 : index
    %c0_7 = arith.constant 0 : index
    %11 = vector.load %arg4[%c0_6, %c0_7] : memref<20x10xf32, #tpu.memory_space<vmem>>, vector<20x10xf32>
    %cst_8 = arith.constant dense<0.000000e+00> : vector<8x10xf32>
    %12 = tpu.matmul %10, %11, %cst_8 {dimension_numbers = #tpu.dot_dimension_numbers<[1], [0], [0], [1], [0, 0, 1, 1], [], []>} : vector<8x20xf32>, vector<20x10xf32>, vector<8x10xf32> -> vector<8x10xf32>
    %c0_9 = arith.constant 0 : index
    %c0_10 = arith.constant 0 : index
    %13 = vector.load %arg5[%c0_9, %c0_10] : memref<1x10xf32, #tpu.memory_space<vmem>>, vector<1x10xf32>
    %14 = vector.broadcast %13 : vector<1x10xf32> to vector<8x10xf32>
    %15 = arith.addf %12, %14 : vector<8x10xf32>
    %16 = arith.negf %15 : vector<8x10xf32>
    %17 = math.exp %16 : vector<8x10xf32>
    %cst_11 = arith.constant 1.000000e+00 : f32
    %18 = vector.broadcast %cst_11 : f32 to vector<8x10xf32>
    %19 = arith.addf %18, %17 : vector<8x10xf32>
    %20 = arith.divf %18, %19 : vector<8x10xf32>
    %c0_12 = arith.constant 0 : index
    %c0_13 = arith.constant 0 : index
    %21 = vector.load %arg6[%c0_12, %c0_13] : memref<10x20xf32, #tpu.memory_space<vmem>>, vector<10x20xf32>
    %cst_14 = arith.constant dense<0.000000e+00> : vector<8x20xf32>
    %22 = tpu.matmul %20, %21, %cst_14 {dimension_numbers = #tpu.dot_dimension_numbers<[1], [0], [0], [1], [0, 0, 1, 1], [], []>} : vector<8x10xf32>, vector<10x20xf32>, vector<8x20xf32> -> vector<8x20xf32>
    %c0_15 = arith.constant 0 : index
    %c0_16 = arith.constant 0 : index
    %23 = vector.load %arg7[%c0_15, %c0_16] : memref<1x20xf32, #tpu.memory_space<vmem>>, vector<1x20xf32>
    %24 = vector.broadcast %23 : vector<1x20xf32> to vector<8x20xf32>
    %25 = arith.addf %22, %24 : vector<8x20xf32>
    %26 = arith.negf %25 : vector<8x20xf32>
    %27 = math.exp %26 : vector<8x20xf32>
    %cst_17 = arith.constant 1.000000e+00 : f32
    %28 = vector.broadcast %cst_17 : f32 to vector<8x20xf32>
    %29 = arith.addf %28, %27 : vector<8x20xf32>
    %30 = arith.divf %28, %29 : vector<8x20xf32>
    %c0_18 = arith.constant 0 : index
    %c0_19 = arith.constant 0 : index
    %31 = vector.load %arg8[%c0_18, %c0_19] : memref<20x37xf32, #tpu.memory_space<vmem>>, vector<20x37xf32>
    %cst_20 = arith.constant dense<0.000000e+00> : vector<8x37xf32>
    %32 = tpu.matmul %30, %31, %cst_20 {dimension_numbers = #tpu.dot_dimension_numbers<[1], [0], [0], [1], [0, 0, 1, 1], [], []>} : vector<8x20xf32>, vector<20x37xf32>, vector<8x37xf32> -> vector<8x37xf32>
    %c0_21 = arith.constant 0 : index
    %c0_22 = arith.constant 0 : index
    %33 = vector.load %arg9[%c0_21, %c0_22] : memref<1x37xf32, #tpu.memory_space<vmem>>, vector<1x37xf32>
    %34 = vector.broadcast %33 : vector<1x37xf32> to vector<8x37xf32>
    %35 = arith.addf %32, %34 : vector<8x37xf32>
    %c0_23 = arith.constant 0 : index
    %c0_24 = arith.constant 0 : index
    %36 = vector.load %arg10[%c0_23, %c0_24] : memref<8x37xf32, #tpu.memory_space<vmem>>, vector<8x37xf32>
    tpu.vector_store %arg10[%c0_23, %c0_24], %35 {strides = array<i32>} : memref<8x37xf32, #tpu.memory_space<vmem>>, vector<8x37xf32>,
    return
  }
  func.func @transform_0(%arg0: i32) -> (i32, i32) {
    %c0_i32 = arith.constant 0 : i32
    %c0_i32_0 = arith.constant 0 : i32
    return %arg0, %c0_i32 : i32, i32
  }
  func.func @transform_1(%arg0: i32) -> (i32, i32) {
    %c0_i32 = arith.constant 0 : i32
    %c0_i32_0 = arith.constant 0 : i32
    %c0_i32_1 = arith.constant 0 : i32
    return %c0_i32, %c0_i32_0 : i32, i32
  }
  func.func @transform_2(%arg0: i32) -> (i32, i32) {
    %c0_i32 = arith.constant 0 : i32
    %c0_i32_0 = arith.constant 0 : i32
    %c0_i32_1 = arith.constant 0 : i32
    return %c0_i32, %c0_i32_0 : i32, i32
  }
  func.func @transform_3(%arg0: i32) -> (i32, i32) {
    %c0_i32 = arith.constant 0 : i32
    %c0_i32_0 = arith.constant 0 : i32
    %c0_i32_1 = arith.constant 0 : i32
    return %c0_i32, %c0_i32_0 : i32, i32
  }
  func.func @transform_4(%arg0: i32) -> (i32, i32) {
    %c0_i32 = arith.constant 0 : i32
    %c0_i32_0 = arith.constant 0 : i32
    %c0_i32_1 = arith.constant 0 : i32
    return %c0_i32, %c0_i32_0 : i32, i32
  }
  func.func @transform_5(%arg0: i32) -> (i32, i32) {
    %c0_i32 = arith.constant 0 : i32
    %c0_i32_0 = arith.constant 0 : i32
    %c0_i32_1 = arith.constant 0 : i32
    return %c0_i32, %c0_i32_0 : i32, i32
  }
  func.func @transform_6(%arg0: i32) -> (i32, i32) {
    %c0_i32 = arith.constant 0 : i32
    %c0_i32_0 = arith.constant 0 : i32
    %c0_i32_1 = arith.constant 0 : i32
    return %c0_i32, %c0_i32_0 : i32, i32
  }
  func.func @transform_7(%arg0: i32) -> (i32, i32) {
    %c0_i32 = arith.constant 0 : i32
    %c0_i32_0 = arith.constant 0 : i32
    %c0_i32_1 = arith.constant 0 : i32
    return %c0_i32, %c0_i32_0 : i32, i32
  }
  func.func @transform_8(%arg0: i32) -> (i32, i32) {
    %c0_i32 = arith.constant 0 : i32
    %c0_i32_0 = arith.constant 0 : i32
    %c0_i32_1 = arith.constant 0 : i32
    return %c0_i32, %c0_i32_0 : i32, i32
  }
  func.func @transform_9(%arg0: i32) -> (i32, i32) {
    %c0_i32 = arith.constant 0 : i32
    %c0_i32_0 = arith.constant 0 : i32
    return %arg0, %c0_i32 : i32, i32
  }
}

</mosaic_0001>

<bundles_post_ra>
// kernel: sae_forward.1
= control target key start
LH: loop header
LB: loop body
LE: loop exit
PB: predicated region body
PF: predicated region fallthrough
CT: control target
= control target key end

     0   :  { %14 = vsyncpa [#allocation3], 0  ;;  %s1191_s0 = inlined_call_operand.vmem [shape: f32[13,37], index: 0, kind: input, shape index: {}]   ;;  %s1192_s1 = inlined_call_operand.vmem [shape: f32[37,20], index: 1, kind: input, shape index: {}]   ;;  %s1193_s2 = inlined_call_operand.vmem [shape: f32[1,20], index: 2, kind: input, shape index: {}]   ;;  %s1194_s3 = inlined_call_operand.vmem [shape: f32[20,10], index: 3, kind: input, shape index: {}]   ;;  %s1195_s4 = inlined_call_operand.vmem [shape: f32[1,10], index: 4, kind: input, shape index: {}]   ;;  %s1196_s5 = inlined_call_operand.vmem [shape: f32[10,20], index: 5, kind: input, shape index: {}]   ;;  %s1197_s6 = inlined_call_operand.vmem [shape: f32[1,20], index: 6, kind: input, shape index: {}]   ;;  %s1198_s7 = inlined_call_operand.vmem [shape: f32[20,37], index: 7, kind: input, shape index: {}]   ;;  %s1199_s8 = inlined_call_operand.vmem [shape: f32[1,37], index: 8, kind: input, shape index: {}]   ;;  %s1200_s9 = inlined_call_operand.hbm [shape: f32[13,37], index: 9, kind: output, shape index: {}]  }
   0x1   :  { %16 = vsyncpa [#allocation3 + $0x1], 0  ;;  %s1020_s30 = smov 0   ;;  %s1022_s10 = smov 0  }
   0x2   :  { %s1024_s11 = smov 0   ;;  %s1026_s12 = smov 0  }
   0x3 LB: > { %s1041_s13 = sadd.s32 4294967295, %s965_s12   ;;  %s772_s14 = sadd.s32 4294967294, %s965_s12   ;;  %s965_s12 = sphi %s1026_s12, %s1206_s12   ;;  %s961_s11 = sphi %s1024_s11, %s1205_s11   ;;  %s957_s10 = sphi %s1022_s10, %s1204_s10   ;;  %s953_s30 = sphi %s1020_s30, %s1203_s30  }
   0x4   : > { %s1045_s15 = sadd.s32 1, %s965_s12   ;;  %s223_s16 = sadd.s32 1, %s961_s11 }
   0x5   : > { %s220_s17 = ssub.s32 %s965_s12, %s1045_s15  ;;  %p233_p0 = scmp.ne.s32.totalorder %s961_s11, %s957_s10 }
   0x6   : > { %p221_p1 = scmp.eq.s32.totalorder %s220_s17, 0  ;;  %p234_p2 = scmp.eq.s32.totalorder %s1041_s13, 1 }
   0x7   : > { %p239_p3 = scmp.ne.s32.totalorder %s957_s10, %s953_s30  ;;  %p240_p4 = scmp.eq.s32.totalorder %s772_s14, 1 }
   0x8   : > { %s1056_s18 = scalar_select %p221_p1, %s961_s11, %s223_s16  }
   0x9   : > { %p1058_p5 = por %p234_p2, %p233_p0  ;;  %p1062_p6 = por %p240_p4, %p239_p3 }
   0xa   : > { %p775_p7 = scmp.ge.s32.totalorder %s965_s12, 1  ;;  %p289_p8 = scmp.lt.s32.totalorder %s965_s12, 3 }
   0xc   : > { %p290_p9 = pnand %p775_p7, %p289_p8 }
   0xd   : > { %p324_p10 = scmp.lt.s32.totalorder (!%p290_p9), %s1041_s13, 1  ;;  %s321_s22 = sand.u32 (!%p290_p9), 1, %s957_s10  }
   0xe   : > { %293 = sbr.rel (%p290_p9) target bundleno = 919 (0x397), region = 56  ;;  %s776_s23 = sshll.u32 (!%p290_p9), %s321_s22, 3 }
   0xf   : > { %s794_s26 = sshll.u32 (!%p290_p9), %s1041_s13, 7  ;;  %s700_s17 = scalar_lea.sflag (!%p290_p9), [#allocation3], %s321_s22 }
  0x10   : > { %s1155_s16 = scalar_lea.hbm (!%p290_p9), %s1200_s9, %s794_s26 }
  0x13   : > { %v333_v0 = vld [vmem:[%s1192_s1 + $0x20] sm:$0x1f]  ;;  %vm345_vm0 = vcmask 1044480   ;;  %v967_v1 = vmov 0.0   ;;  %v332_v2 = vld [vmem:[%s1192_s1 + $0x18] sm:$0xff]  ;;  %vm968_vm1 = vmmov 0  }
  0x14   : > { %814 = vmatprep.subr.mxu0 %v967_v1  ;;  %827 = vmatprep.subr.mxu1 %v967_v1  ;;  %v331_v3 = vld [vmem:[%s1192_s1 + $0x10] sm:$0xff]  ;;  %s325_s27 = scalar_select %p324_p10, %s1041_s13, 1  ;;  %v330_v4 = vld [vmem:[%s1192_s1 + $0x8] sm:$0xff]  ;;  %v329_v5 = vld [vmem:[%s1192_s1] sm:$0xff]  ;;  %vm341_vm2 = vcmask 302080   ;;  %vm439_vm3 = vcmask 1043456  }
  0x15   : > { %815 = vmatpush3.msk.msra.mxu0 %vm345_vm0, %v333_v0  ;;  %824 = vmatprep.mubr.msk.f32.mxu0 %vm968_vm1, %v967_v1  ;;  %v427_v7 = vld [vmem:[%s1194_s3 + $0x10] sm:$0xf]  ;;  %v426_v8 = vld [vmem:[%s1194_s3 + $0x8] sm:$0xff]  ;;  %v425_v9 = vld [vmem:[%s1194_s3] sm:$0xff]  ;;  %vm435_vm4 = vcmask 162816   ;;  %vm532_vm5 = vcmask 1041408  }
  0x16   : > { %816 = vmatprep.subr.mxu0 %v967_v1  ;;  %833 = vmatprep.mubr.msk.f32.mxu1 %vm968_vm1, %v967_v1  ;;  %s777_s14 = sshll.u32 %s325_s27, 3  ;;  %v778_v10 = vld [vmem:[%s1193_s2] ss:$0 sm:$0xff]  ;;  %v520_v18 = vld [vmem:[%s1196_s5 + $0x8] sm:$0x3]  ;;  %vm528_vm6 = vcmask 80896  }
  0x17   : > { %817 = vmatpush3.msra.mxu0 %v332_v2  ;;  %s327_s21 = scalar_lea.vmem %s1191_s0, %s777_s14  ;;  %828 = vmatpush3.msk.msra.mxu1 %vm439_vm3, %v427_v7  ;;  %v519_v19 = vld [vmem:[%s1196_s5] sm:$0xff]  ;;  %v614_v28 = vld [vmem:[%s1198_s7 + $0x10] sm:$0xf]  ;;  %v613_v29 = vld [vmem:[%s1198_s7 + $0x8] sm:$0xff]  ;;  %s323_s27 = scalar_lea.vmem [#allocation2], %s776_s23 }
  0x18   : > { %818 = vmatprep.subr.mxu0 %v967_v1  ;;  %v328_v6 = vld [vmem:[%s327_s21] sm:$0xff]  ;;  %829 = vmatprep.subr.mxu1 %v967_v1  ;;  %s713_s28 = sshll.u32 %s323_s27, 4  ;;  %s969_s13 = smov [#allocation2]   ;;  %s714_s28 = int_to_ptr.vmem [resolvable:$true] %s713_s28 }
  0x19   : > { %819 = vmatpush3.msra.mxu0 %v331_v3  ;;  %830 = vmatpush3.msra.mxu1 %v426_v8  ;;  %v782_v20 = vld [vmem:[%s1195_s4] ss:$0 sm:$0xff]  ;;  %s905_s21 = scalar_lea.vmem %s714_s28, 128  ;;  %s909_s23 = sshll.u32 %s969_s13, 4  ;;  %s910_s23 = int_to_ptr.vmem [resolvable:$false] %s909_s23 }
  0x1a   : > { %820 = vmatprep.subr.mxu0 %v967_v1  ;;  %831 = vmatprep.subr.mxu1 %v967_v1  ;;  %v612_v30 = vld [vmem:[%s1198_s7] sm:$0xff]  ;;  %p906_p11 = scmp.ne.s32.totalorder %s714_s28, %s905_s21  ;;  %s911_s24 = scalar_lea.vmem %s910_s23, 256 }
  0x1b   : > { %821 = vmatpush3.msra.mxu0 %v330_v4  ;;  %832 = vmatpush3.msra.mxu1 %v425_v9  ;;  %v786_v31 = vld [vmem:[%s1197_s6] ss:$0 sm:$0xff]  ;;  %p912_p0 = scmp.lt.s32.totalorder %s714_s28, %s910_s23  ;;  %p913_p1 = scmp.lt.s32.totalorder %s911_s24, %s905_s21 }
  0x1c   : > { %822 = vmatprep.subr.mxu0 %v967_v1  ;;  %836 = vmatprep.subr.mxu1 %v967_v1  ;;  %v790_v39 = vld [vmem:[%s1199_s8] ss:$0 sm:$0xff]  ;;  %p907_p12 = pnand %p906_p11, %p1058_p5 }
  0x1d   : > { %823 = vmatpush3.msra.mxu0 %v329_v5  ;;  %p914_p2 = por %p913_p1, %p912_p0 }
  0x1e   : > { %825 = vmatmul.mubr.msk.f32.vlgmr.msra.gmra.mxu0 %vm341_vm2, %v328_v6  ;;  %843 = vmatprep.subr.mxu0 %v967_v1  ;;  %p908_p13 = pneg %p907_p12 }
  0x1f   : > { %849 = vmatprep.mubr.msk.f32.mxu0 %vm968_vm1, %v967_v1  ;;  %844 = vmatpush3.msk.msra.mxu0 %vm439_vm3, %v614_v28 }
  0x20   : > { %845 = vmatprep.subr.mxu0 %v967_v1  ;;  %p915_p3 = pnand %p914_p2, %p908_p13 }
  0x21   : > { %846 = vmatpush3.msra.mxu0 %v613_v29 }
  0x22   : > { %847 = vmatprep.subr.mxu0 %v967_v1 }
  0x23   : > { %848 = vmatpush3.msra.mxu0 %v612_v30 }
  0xde   : > { %v415_v11 = vpop.f32.mrf.mxu0 }
  0xdf   : > { %v416_v12 = vadd.f32 %v778_v10, %v415_v11 }
  0xe0   : > { %v826_v13 = vpop.f32.mrf.mxu0 }
  0xe1   : > { %v781_v14 = vmul.f32 -1.442695, %v416_v12 }
  0xe3   : > { %893 = vpow2.f32 %v781_v14 }
  0xf0   : > { %v894_v15 = vpop.eup %893 }
  0xf1   : > { %v422_v16 = vadd.f32 1.0, %v894_v15 }
  0xf3   : > { %895 = vrcp.f32 %v422_v16 }
 0x100   : > { %v896_v17 = vpop.eup %895 }
 0x101   : > { %834 = vmatmul.mubr.msk.f32.vlgmr.msra.gmra.mxu1 %vm435_vm4, %v896_v17 }
 0x102   : > { %840 = vmatprep.mubr.msk.f32.mxu1 %vm968_vm1, %v967_v1  ;;  %837 = vmatpush3.msk.msra.mxu1 %vm532_vm5, %v520_v18 }
 0x103   : > { %838 = vmatprep.subr.mxu1 %v967_v1 }
 0x104   : > { %839 = vmatpush3.msra.mxu1 %v519_v19 }
 0x1c1   : > { %v509_v21 = vpop.f32.mrf.mxu1 }
 0x1c2   : > { %v510_v22 = vadd.f32 %v782_v20, %v509_v21 }
 0x1c3   : > { %v835_v23 = vpop.f32.mrf.mxu1 }
 0x1c4   : > { %v785_v24 = vmul.f32 -1.442695, %v510_v22 }
 0x1c6   : > { %897 = vpow2.f32 %v785_v24 }
 0x1d3   : > { %v898_v25 = vpop.eup %897 }
 0x1d4   : > { %v516_v26 = vadd.f32 1.0, %v898_v25 }
 0x1d6   : > { %899 = vrcp.f32 %v516_v26 }
 0x1e3   : > { %v900_v27 = vpop.eup %899 }
 0x1e4   : > { %841 = vmatmul.mubr.msk.f32.vlgmr.msra.gmra.mxu1 %vm528_vm6, %v900_v27 }
 0x2a4   : > { %v602_v32 = vpop.f32.mrf.mxu1 }
 0x2a5   : > { %v603_v33 = vadd.f32 %v786_v31, %v602_v32 }
 0x2a6   : > { %v842_v34 = vpop.f32.mrf.mxu1 }
 0x2a7   : > { %v789_v35 = vmul.f32 -1.442695, %v603_v33 }
 0x2a9   : > { %901 = vpow2.f32 %v789_v35 }
 0x2b6   : > { %v902_v36 = vpop.eup %901 }
 0x2b7   : > { %v609_v37 = vadd.f32 1.0, %v902_v36 }
 0x2b9   : > { %903 = vrcp.f32 %v609_v37 }
 0x2c6   : > { %v904_v38 = vpop.eup %903 }
 0x2c7   : > { %850 = vmatmul.mubr.msk.f32.vlgmr.msra.gmra.mxu0 %vm435_vm4, %v904_v38 }
 0x387   : > { %v694_v40 = vpop.f32.mrf.mxu0 }
 0x388   : > { %v695_v41 = vadd.f32 %v790_v39, %v694_v40 }
 0x389   : > { %v851_v42 = vpop.f32.mrf.mxu0 }
 0x38a   : > { %698 = vst.msk [vmem:[%s323_s27] sm:$0xff] %vm341_vm2, %v695_v41 }
 0x38b   : > { %918 = shalt.err (!%p915_p3)
}
 0x38c   : > { %s919_s25 = scalar_lea.hbm %s1155_s16, 128  ;;  %s923_s27 = scalar_lea.hbm %s1200_s9, 256 }
 0x38d   : > { %p920_p4 = scmp.ne.s32.totalorder %s1155_s16, %s919_s25  ;;  %p924_p9 = scmp.lt.s32.totalorder %s1155_s16, %s1200_s9 }
 0x38e   : > { %p925_p10 = scmp.lt.s32.totalorder %s923_s27, %s919_s25 }
 0x38f   : > { %p921_p7 = pnand %p920_p4, %p1058_p5 }
 0x390   : > { %p926_p11 = por %p925_p10, %p924_p9 }
 0x391   : > { %p922_p8 = pneg %p921_p7 }
 0x393   : > { %p927_p12 = pnand %p926_p11, %p922_p8 }
 0x395   : > { %930 = shalt.err (!%p927_p12)
}
 0x396   : > { %852 = dma.vmem_to_hbm [thread:$0]  (%p1058_p5), %s714_s28, 128, %s1155_s16, %s700_s17  }
 0x397 PF: > { %p858_p13 = scmp.ge.s32.totalorder %s965_s12, 2  ;;  %s725_s21 = sand.u32 1, %s953_s30  }
 0x398   : > { %s726_s13 = scalar_lea.sflag [#allocation3], %s725_s21 }
 0x399   : > { %p855_p0 = pnand %p858_p13, %p1062_p6 }
 0x39b   : > { %p856_p1 = pneg %p855_p0 }
 0x39d   : > { %948 = dma.done.wait (%p856_p1), %s726_s13, 128  }
 0x39e   : > { %950 = vsyncadd (%p856_p1), %s726_s13, 4294967168  ;;  %p19_p2 = scmp.ge.s32.totalorder %s1045_s15, 4   ;;  %s1203_s30 = smov %s957_s10 }
 0x39f   : > { %s1204_s10 = smov %s961_s11  ;;  %s1205_s11 = smov %s1056_s18 }
 0x3a0   : > { %s1206_s12 = smov %s1045_s15  ;;  %21 = sbr.rel (!%p19_p2) target bundleno = 3 (0x3), region = 91 }
 0x3a5   :  { %731 = vsyncpa [#allocation3], 1 }
 0x3a6   :  { %733 = vsyncpa [#allocation3 + $0x1], 1 }

</bundles_post_ra>
